<compile_context>
chip_gen: v6e
topology: v6e:2x2x1
jax: 0.10.0
libtpu: 0.0.40
codegen_flags: <defaults>
</compile_context>

<pallas_src>
import functools

import jax
import jax.numpy as jnp
from jax.experimental import pallas as pl
from jax.experimental.pallas import tpu as pltpu

_MiB = 1024 * 1024


def _round_up(x: int, m: int) -> int:
    return ((x + m - 1) // m) * m


def _vmem_budget_and_cap():
    """Returns (usable budget, physical capacity) in bytes, generation-aware."""
    cap = None
    try:
        info = pltpu.get_tpu_info()
        cap = getattr(info, "vmem_capacity_bytes", None)
    except Exception:
        cap = None
    if not cap:
        cap = 64 * _MiB  # conservative fallback: assume v7x-sized VMEM per core
    return int(cap * 0.75), int(cap)


# ----------------------------------------------------------------------------- kernels
def _proj_kernel_single_k(x_ref, w_ref, b_ref, o_ref):
    # Single K step: fuse matmul + bias + cast, no accumulator scratch at all.
    acc = jax.lax.dot_general(
        x_ref[...],
        w_ref[...],
        dimension_numbers=(((1,), (1,)), ((), ())),  # contract d_model (NT matmul)
        preferred_element_type=jnp.float32,
    )
    o_ref[...] = (acc + b_ref[...].astype(jnp.float32)).astype(o_ref.dtype)


def _proj_kernel_multi_k(x_ref, w_ref, b_ref, o_ref, acc_ref):
    k = pl.program_id(2)

    @pl.when(k == 0)
    def _():
        acc_ref[...] = jnp.zeros_like(acc_ref)

    acc_ref[...] += jax.lax.dot_general(
        x_ref[...],
        w_ref[...],
        dimension_numbers=(((1,), (1,)), ((), ())),
        preferred_element_type=jnp.float32,
    )

    @pl.when(k == pl.num_programs(2) - 1)
    def _():
        o_ref[...] = (acc_ref[...] + b_ref[...].astype(jnp.float32)).astype(o_ref.dtype)


# ----------------------------------------------------------------------------- wrapper
@functools.partial(jax.jit, static_argnames=("tm", "tn", "tk", "bf16_operands"))
def projection_layer(x, weight, bias, *, tm=1024, tn=2048, tk=1024, bf16_operands=False):
    """
    x:      (B, S, d_model)
    weight: (vocab_size, d_model)   -- PyTorch nn.Linear convention (NOT transposed)
    bias:   (vocab_size,)
    returns (B, S, vocab_size) in x.dtype
    """
    B, S, d_model = x.shape
    vocab_size, d_model_w = weight.shape
    assert d_model_w == d_model
    assert bias.shape == (vocab_size,)

    out_dtype = x.dtype
    if bf16_operands:  # opt-in (v5e): feed the MXU bf16, keep f32 accumulation
        x = x.astype(jnp.bfloat16)
        weight = weight.astype(jnp.bfloat16)

    M = B * S
    x2d = x.reshape(M, d_model)

    x_bytes = jnp.dtype(x.dtype).itemsize
    w_bytes = jnp.dtype(weight.dtype).itemsize
    o_bytes = jnp.dtype(out_dtype).itemsize

    budget, vmem_cap = _vmem_budget_and_cap()

    # --- M tile: sublane-packing-aware rounding (8 f32 / 16 bf16 / 32 int8) ----
    sub = max(8, 32 // x_bytes)
    tm_eff = min(_round_up(tm, sub), _round_up(M, sub))

    # --- N (vocab) tile: lane-dense ---------------------------------------------
    tn_eff = min(_round_up(tn, 128), _round_up(vocab_size, 128))

    # --- K tile: prefer a single full-K step (no accumulator) when VMEM allows;
    #     otherwise a 128-aligned divisor of d_model (no K padding); otherwise pad.
    tk_full_limit = 8192 if budget >= 96 * _MiB else 2048
    pad_k = False
    if d_model <= max(tk, tk_full_limit):
        tk_eff = d_model
    else:
        tk_eff = 0
        cand = (min(tk, 1024) // 128) * 128
        while cand >= 128:
            if d_model % cand == 0:
                tk_eff = cand
                break
            cand -= 128
        if tk_eff == 0:
            tk_eff = max(128, (min(tk, 1024) // 128) * 128)
            pad_k = True

    K_eff = _round_up(d_model, tk_eff) if pad_k else d_model
    n_k = K_eff // tk_eff
    multi_k = n_k > 1

    # --- shrink tiles against the generation-aware VMEM budget ------------------
    def need(_tm, _tn, _tk):
        n = (2 * _tm * _tk * x_bytes      # x tiles (double-buffered)
             + 2 * _tn * _tk * w_bytes    # weight tiles (dominant HBM stream)
             + 2 * 8 * _tn * w_bytes      # bias tiles (sublane-padded)
             + 2 * _tm * _tn * o_bytes)   # output tiles
        if multi_k:
            n += _tm * _tn * 4            # f32 accumulator scratch
        return n

    while need(tm_eff, tn_eff, tk_eff) > budget:
        if tn_eff > 256:
            tn_eff = max(256, ((tn_eff // 2) // 128) * 128)
        elif tm_eff > sub:
            tm_eff = max(sub, _round_up(tm_eff // 2, sub))
        else:
            break

    grid_m = pl.cdiv(M, tm_eff)
    grid_n = pl.cdiv(vocab_size, tn_eff)
    # v7x has 2 TensorCores: make sure the parallel grid has >= 2 iterations
    # for small-M (decode) problems whenever the vocab allows it.
    if grid_m * grid_n < 2 and tn_eff >= 256:
        tn_eff = max(128, ((tn_eff // 2) // 128) * 128)
        grid_n = pl.cdiv(vocab_size, tn_eff)

    # --- K padding only when unavoidable (weight is otherwise streamed as-is) ---
    w_in = weight
    if pad_k:
        x2d = jnp.pad(x2d, ((0, 0), (0, K_eff - d_model)))
        w_in = jnp.pad(weight, ((0, 0), (0, K_eff - d_model)))
    b2d = bias.reshape(1, vocab_size)

    M_out = grid_m * tm_eff
    V_out = grid_n * tn_eff
    grid = (grid_m, grid_n, n_k)

    # --- scheduler / VMEM hints --------------------------------------------------
    cost = pl.CostEstimate(
        flops=2 * M * d_model * vocab_size,
        transcendentals=0,
        bytes_accessed=(M * d_model * x_bytes
                        + vocab_size * d_model * w_bytes
                        + vocab_size * w_bytes
                        + M * vocab_size * o_bytes),
    )
    need_bytes = need(tm_eff, tn_eff, tk_eff)
    vmem_limit = int(min(int(vmem_cap * 0.9), max(32 * _MiB, int(need_bytes * 1.5))))

    if multi_k:
        kernel = _proj_kernel_multi_k
        scratch = [pltpu.VMEM((tm_eff, tn_eff), jnp.float32)]
    else:
        kernel = _proj_kernel_single_k
        scratch = []

    out = pl.pallas_call(
        kernel,
        out_shape=jax.ShapeDtypeStruct((M_out, V_out), out_dtype),
        grid_spec=pltpu.PrefetchScalarGridSpec(
            num_scalar_prefetch=0,
            grid=grid,
            in_specs=[
                pl.BlockSpec((tm_eff, tk_eff), lambda i, j, k: (i, k)),  # X rows
                pl.BlockSpec((tn_eff, tk_eff), lambda i, j, k: (j, k)),  # W (native layout)
                pl.BlockSpec((1, tn_eff), lambda i, j, k: (0, j)),       # bias
            ],
            out_specs=pl.BlockSpec((tm_eff, tn_eff), lambda i, j, k: (i, j)),
            scratch_shapes=scratch,
        ),
        compiler_params=pltpu.CompilerParams(
            dimension_semantics=("parallel", "parallel", "arbitrary"),
            vmem_limit_bytes=vmem_limit,
        ),
        cost_estimate=cost,
    )(x2d, w_in, b2d)

    return out[:M, :vocab_size].reshape(B, S, vocab_size)


if __name__ == "__main__":
    # Small shapes consistent with the module's forward signature.
    batch, seq_len, d_model, vocab_size = 2, 8, 32, 512

    key = jax.random.PRNGKey(0)
    kx, kw, kb = jax.random.split(key, 3)

    x = jax.random.normal(kx, (batch, seq_len, d_model), dtype=jnp.float32)
    # Deterministic parameter init (roughly matches nn.Linear's uniform scale).
    bound = 1.0 / (d_model ** 0.5)
    weight = jax.random.uniform(
        kw, (vocab_size, d_model), minval=-bound, maxval=bound, dtype=jnp.float32
    )
    bias = jax.random.uniform(
        kb, (vocab_size,), minval=-bound, maxval=bound, dtype=jnp.float32
    )

    ref = x @ weight.T + bias

    # ---- f32 path: exact semantics check ------------------------------------
    out = projection_layer(x, weight, bias)
    out = jax.block_until_ready(out)
    assert out.shape == (batch, seq_len, vocab_size)
    assert jnp.allclose(out, ref, atol=1e-5, rtol=1e-5), "f32 mismatch vs reference"

    # ---- bf16 path: recommended for real LM-head sizes (f32 accumulation) ---
    out_bf16 = projection_layer(
        x.astype(jnp.bfloat16), weight.astype(jnp.bfloat16), bias.astype(jnp.bfloat16)
    )
    out_bf16 = jax.block_until_ready(out_bf16)
    assert jnp.allclose(out_bf16.astype(jnp.float32), ref, atol=3e-2, rtol=3e-2), (
        "bf16 mismatch vs reference"
    )

    print("KERNEL_OK")
</pallas_src>

<mosaic_0001>
module attributes {stable_mosaic.version = 11 : i64} {
  func.func @_proj_kernel_single_k(%arg0: i32, %arg1: i32, %arg2: i32, %arg3: memref<16x32xf32, #tpu.memory_space<vmem>>, %arg4: memref<256x32xf32, #tpu.memory_space<vmem>>, %arg5: memref<1x256xf32, #tpu.memory_space<vmem>>, %arg6: memref<16x256xf32, #tpu.memory_space<vmem>>) attributes {dimension_semantics = [#tpu.dimension_semantics<parallel>, #tpu.dimension_semantics<parallel>, #tpu.dimension_semantics<arbitrary>], iteration_bounds = array<i64: 1, 2, 1>, scalar_prefetch = 0 : i64, scratch_operands = 0 : i64, tpu.core_type = #tpu.core_type<tc>, window_params = [{transform_indices = @transform_0, window_bounds = array<i64: 16, 32>}, {transform_indices = @transform_1, window_bounds = array<i64: 256, 32>}, {transform_indices = @transform_2, window_bounds = array<i64: 1, 256>}, {transform_indices = @transform_3, window_bounds = array<i64: 16, 256>}]} {
    %c0 = arith.constant 0 : index
    %c0_0 = arith.constant 0 : index
    %0 = vector.load %arg3[%c0, %c0_0] : memref<16x32xf32, #tpu.memory_space<vmem>>, vector<16x32xf32>
    %c0_1 = arith.constant 0 : index
    %c0_2 = arith.constant 0 : index
    %1 = vector.load %arg4[%c0_1, %c0_2] : memref<256x32xf32, #tpu.memory_space<vmem>>, vector<256x32xf32>
    %cst = arith.constant dense<0.000000e+00> : vector<16x256xf32>
    %2 = tpu.matmul %0, %1, %cst {dimension_numbers = #tpu.dot_dimension_numbers<[1], [1], [0], [0], [0, 0, 1, 0], [], []>} : vector<16x32xf32>, vector<256x32xf32>, vector<16x256xf32> -> vector<16x256xf32>
    %c0_3 = arith.constant 0 : index
    %c0_4 = arith.constant 0 : index
    %3 = vector.load %arg5[%c0_3, %c0_4] : memref<1x256xf32, #tpu.memory_space<vmem>>, vector<1x256xf32>
    %4 = vector.broadcast %3 : vector<1x256xf32> to vector<16x256xf32>
    %5 = arith.addf %2, %4 : vector<16x256xf32>
    %c0_5 = arith.constant 0 : index
    %c0_6 = arith.constant 0 : index
    %6 = vector.load %arg6[%c0_5, %c0_6] : memref<16x256xf32, #tpu.memory_space<vmem>>, vector<16x256xf32>
    tpu.vector_store %arg6[%c0_5, %c0_6], %5 {strides = array<i32>} : memref<16x256xf32, #tpu.memory_space<vmem>>, vector<16x256xf32>,
    return
  }
  func.func @transform_0(%arg0: i32, %arg1: i32, %arg2: i32) -> (i32, i32) {
    %c0_i32 = arith.constant 0 : i32
    return %arg0, %arg2 : i32, i32
  }
  func.func @transform_1(%arg0: i32, %arg1: i32, %arg2: i32) -> (i32, i32) {
    %c0_i32 = arith.constant 0 : i32
    return %arg1, %arg2 : i32, i32
  }
  func.func @transform_2(%arg0: i32, %arg1: i32, %arg2: i32) -> (i32, i32) {
    %c0_i32 = arith.constant 0 : i32
    %c0_i32_0 = arith.constant 0 : i32
    return %c0_i32, %arg1 : i32, i32
  }
  func.func @transform_3(%arg0: i32, %arg1: i32, %arg2: i32) -> (i32, i32) {
    %c0_i32 = arith.constant 0 : i32
    return %arg0, %arg1 : i32, i32
  }
}

</mosaic_0001>

<bundles_post_ra>
// kernel: projection_layer.1
= control target key start
LH: loop header
LB: loop body
LE: loop exit
PB: predicated region body
PF: predicated region fallthrough
CT: control target
= control target key end

     0   :  { %8 = vsyncpa [#allocation3], 0  ;;  %s1121_s0 = inlined_call_operand.vmem [shape: f32[16,32], index: 0, kind: input, shape index: {}]   ;;  %s1122_s1 = inlined_call_operand.vmem [shape: f32[512,32], index: 1, kind: input, shape index: {}]   ;;  %s1123_s2 = inlined_call_operand.vmem [shape: f32[1,512], index: 2, kind: input, shape index: {}]   ;;  %s1124_s3 = inlined_call_operand.hbm [shape: f32[16,512], index: 3, kind: output, shape index: {}]  }
   0x1   :  { %10 = vsyncpa [#allocation3 + $0x1], 0  ;;  %s888_s12 = smov 0   ;;  %s890_s13 = smov 0  }
   0x2   :  { %s892_s14 = smov 0   ;;  %s894_s15 = smov 0  }
   0x3   :  { %s896_s16 = smov 0   ;;  %s898_s17 = smov 0  }
   0x4 LB: > { %s610_s18 = sadd.s32 4294967295, %s862_s17   ;;  %s611_s19 = sadd.s32 4294967294, %s862_s17   ;;  %s862_s17 = sphi %s898_s17, %s16_s17   ;;  %s858_s16 = sphi %s896_s16, %s1131_s16   ;;  %s854_s15 = sphi %s894_s15, %s1130_s15   ;;  %s850_s14 = sphi %s892_s14, %s1129_s14   ;;  %s846_s13 = sphi %s890_s13, %s1128_s13   ;;  %s842_s12 = sphi %s888_s12, %s1127_s12  }
   0x5   : > { %s31_s20 = sadd.s32 1, %s858_s16  ;;  %s126_s21 = sadd.s32 1, %s850_s14 }
   0x6   : > { %p33_p0 = scmp.ge.s32.totalorder %s31_s20, 2  ;;  %p136_p1 = scmp.ne.s32.totalorder %s850_s14, %s846_s13 }
   0x7   : > { %p137_p2 = scmp.eq.s32.totalorder %s610_s18, 1  ;;  %p142_p3 = scmp.ne.s32.totalorder %s846_s13, %s842_s12 }
   0x8   : > { %s1133_s20 = smov (%p33_p0, %s31_s20), 0  ;;  %p143_p5 = scmp.eq.s32.totalorder %s611_s19, 1 }
   0x9   : > { %p928_p4 = por %p137_p2, %p136_p1  ;;  %s122_s23 = ssub.s32 %s858_s16, %s1133_s20 }
   0xa   : > { %p615_p6 = scmp.ge.s32.totalorder %s862_s17, 1  ;;  %p124_p7 = scmp.eq.s32.totalorder %s122_s23, 0 }
   0xb   : > { %p935_p8 = por %p143_p5, %p142_p3  ;;  %p193_p9 = scmp.lt.s32.totalorder %s862_s17, 3 }
   0xc   : > { %s941_s25 = scalar_select %p124_p7, %s850_s14, %s126_s21  }
   0xd   : > { %p194_p10 = pnand %p615_p6, %p193_p9 }
   0xe   : > { %s617_s26 = sshll.u32 (!%p194_p10), %s854_s15, 5  ;;  %s619_s8 = sshll.u32 (!%p194_p10), %s854_s15, 1 }
   0xf   : > { %197 = sbr.rel (%p194_p10) target bundleno = 300 (0x12c), region = 32  ;;  %p242_p11 = scmp.lt.s32.totalorder (!%p194_p10), %s617_s26, 63 }
  0x10   : > { %p251_p12 = scmp.lt.s32.totalorder (!%p194_p10), %s619_s8, 3  ;;  %s229_s9 = sand.u32 (!%p194_p10), 1, %s846_s13  }
  0x11   : > { %s616_s19 = sshll.u32 (!%p194_p10), %s229_s9, 5 }
  0x12   : > { %s231_s21 = scalar_lea.vmem (!%p194_p10), [#allocation2], %s616_s19 }
  0x13   : > { %s504_s23 = sshll.u32 (!%p194_p10), %s231_s21, 4  ;;  %s1069_s23 = int_to_ptr.vmem [resolvable:$true] %s504_s23 }
  0x14   : > { %vm303_vm0 = vcmask 261120   ;;  %v947_v0 = vld [vmem:[%s1121_s0] sm:$0xff]  ;;  %v952_v1 = vld [vmem:[%s1121_s0 + $0x8] sm:$0xff]  ;;  %s1135_s26 = smov (!%p242_p11, %s617_s26), 63  ;;  %v293_v34 = vlaneseq  ;;  %s1137_s8 = smov (!%p251_p12, %s619_s8), 3 }
  0x15   : > { %692 = vmatprep.mubr.msk.f32.mxu0 %vm303_vm0, %v947_v0  ;;  %694 = vmatprep.mubr.msk.f32.mxu1 %vm303_vm0, %v952_v1  ;;  %s618_s4 = sshll.u32 %s1135_s26, 3  ;;  %s253_s18 = scalar_lea.vmem %s1123_s2, %s1137_s8 }
  0x16   : > { %s961_s7 = scalar_lea.vmem %s1122_s1, %s618_s4  ;;  %v294_v35 = vshrl.u32 %v293_v34, 7  ;;  %v291_v37 = vld [vmem:[%s253_s18] sm:$0x3]  ;;  %s659_s26 = sshll.u32 %s854_s15, 8 }
  0x17   : > { %v290_v2 = vld [vmem:[%s961_s7 + $0xf8] sm:$0xff]  ;;  %v289_v4 = vld [vmem:[%s961_s7 + $0xf0] sm:$0xff]  ;;  %v288_v6 = vld [vmem:[%s961_s7 + $0xe8] sm:$0xff]  ;;  %s1074_s29 = scalar_lea.hbm %s1124_s3, %s659_s26  ;;  %s1076_s15 = scalar_lea.sflag [#allocation3], %s229_s9 }
  0x18   : > { %v274_v3 = vld [vmem:[%s961_s7 + $0x78] sm:$0xff]  ;;  %660 = vmatprep.subr.msk.mxu0 %vm303_vm0, %v290_v2  ;;  %696 = vmatprep.subr.msk.mxu1 %vm303_vm0, %v290_v2  ;;  %v273_v5 = vld [vmem:[%s961_s7 + $0x70] sm:$0xff]  ;;  %v272_v7 = vld [vmem:[%s961_s7 + $0x68] sm:$0xff]  ;;  %v295_v36 = vsub.s32 0, %v294_v35  ;;  %v299_v38 = vsub.s32 1, %v294_v35  ;;  %s786_s30 = scalar_lea.vmem %s1069_s23, 512 }
  0x19   : > { %661 = vmatpush3.xpose.msk.msra.mxu0 %vm303_vm0, %v274_v3  ;;  %712 = vmatpush3.xpose.msk.msra.mxu1 %vm303_vm0, %v274_v3  ;;  %v287_v8 = vld [vmem:[%s961_s7 + $0xe0] sm:$0xff]  ;;  %v286_v10 = vld [vmem:[%s961_s7 + $0xd8] sm:$0xff]  ;;  %v285_v12 = vld [vmem:[%s961_s7 + $0xd0] sm:$0xff]  ;;  %p787_p13 = scmp.ne.s32.totalorder %s1069_s23, %s786_s30  ;;  %s864_s4 = smov [#allocation2]  }
  0x1a   : > { %662 = vmatprep.subr.msk.mxu0 %vm303_vm0, %v289_v4  ;;  %697 = vmatprep.subr.msk.mxu1 %vm303_vm0, %v289_v4  ;;  %v271_v9 = vld [vmem:[%s961_s7 + $0x60] sm:$0xff]  ;;  %v270_v11 = vld [vmem:[%s961_s7 + $0x58] sm:$0xff]  ;;  %v269_v13 = vld [vmem:[%s961_s7 + $0x50] sm:$0xff]  ;;  %v296_v39 = vrot.slane %v291_v37, %v295_v36  ;;  %v300_v40 = vrot.slane %v291_v37, %v299_v38  ;;  %s790_s5 = sshll.u32 %s864_s4, 4  ;;  %s791_s5 = int_to_ptr.vmem [resolvable:$false] %s790_s5 }
  0x1b   : > { %v284_v14 = vld [vmem:[%s961_s7 + $0xc8] sm:$0xff]  ;;  %v283_v16 = vld [vmem:[%s961_s7 + $0xc0] sm:$0xff]  ;;  %v282_v18 = vld [vmem:[%s961_s7 + $0xb8] sm:$0xff]  ;;  %p788_p0 = pnand %p787_p13, %p928_p4  ;;  %s792_s6 = scalar_lea.vmem %s791_s5, 1024 }
  0x1c   : > { %v268_v15 = vld [vmem:[%s961_s7 + $0x48] sm:$0xff]  ;;  %v267_v17 = vld [vmem:[%s961_s7 + $0x40] sm:$0xff]  ;;  %v266_v19 = vld [vmem:[%s961_s7 + $0x38] sm:$0xff]  ;;  %p793_p2 = scmp.lt.s32.totalorder %s1069_s23, %s791_s5  ;;  %p794_p3 = scmp.lt.s32.totalorder %s792_s6, %s786_s30 }
  0x1d   : > { %663 = vmatpush3.xpose.msk.msra.mxu0 %vm303_vm0, %v273_v5  ;;  %713 = vmatpush3.xpose.msk.msra.mxu1 %vm303_vm0, %v273_v5  ;;  %v281_v20 = vld [vmem:[%s961_s7 + $0xb0] sm:$0xff]  ;;  %v280_v22 = vld [vmem:[%s961_s7 + $0xa8] sm:$0xff]  ;;  %v279_v24 = vld [vmem:[%s961_s7 + $0xa0] sm:$0xff]  ;;  %p789_p1 = pneg %p788_p0 }
  0x1e   : > { %664 = vmatprep.subr.msk.mxu0 %vm303_vm0, %v288_v6  ;;  %698 = vmatprep.subr.msk.mxu1 %vm303_vm0, %v288_v6  ;;  %v265_v21 = vld [vmem:[%s961_s7 + $0x30] sm:$0xff]  ;;  %v264_v23 = vld [vmem:[%s961_s7 + $0x28] sm:$0xff]  ;;  %v263_v25 = vld [vmem:[%s961_s7 + $0x20] sm:$0xff]  ;;  %p795_p5 = por %p794_p3, %p793_p2 }
  0x1f   : > { %v278_v26 = vld [vmem:[%s961_s7 + $0x98] sm:$0xff]  ;;  %v277_v28 = vld [vmem:[%s961_s7 + $0x90] sm:$0xff]  ;;  %v276_v30 = vld [vmem:[%s961_s7 + $0x88] sm:$0xff] }
  0x20   : > { %v262_v27 = vld [vmem:[%s961_s7 + $0x18] sm:$0xff]  ;;  %v261_v29 = vld [vmem:[%s961_s7 + $0x10] sm:$0xff]  ;;  %v260_v31 = vld [vmem:[%s961_s7 + $0x8] sm:$0xff]  ;;  %p796_p6 = pnand %p795_p5, %p789_p1 }
  0x21   : > { %665 = vmatpush3.xpose.msk.msra.mxu0 %vm303_vm0, %v272_v7  ;;  %714 = vmatpush3.xpose.msk.msra.mxu1 %vm303_vm0, %v272_v7  ;;  %v275_v32 = vld [vmem:[%s961_s7 + $0x80] sm:$0xff] }
  0x22   : > { %666 = vmatprep.subr.msk.mxu0 %vm303_vm0, %v287_v8  ;;  %699 = vmatprep.subr.msk.mxu1 %vm303_vm0, %v287_v8  ;;  %v259_v33 = vld [vmem:[%s961_s7] sm:$0xff] }
  0x25   : > { %667 = vmatpush3.xpose.msk.msra.mxu0 %vm303_vm0, %v271_v9  ;;  %715 = vmatpush3.xpose.msk.msra.mxu1 %vm303_vm0, %v271_v9 }
  0x26   : > { %668 = vmatprep.subr.msk.mxu0 %vm303_vm0, %v286_v10  ;;  %700 = vmatprep.subr.msk.mxu1 %vm303_vm0, %v286_v10 }
  0x29   : > { %669 = vmatpush3.xpose.msk.msra.mxu0 %vm303_vm0, %v270_v11  ;;  %716 = vmatpush3.xpose.msk.msra.mxu1 %vm303_vm0, %v270_v11 }
  0x2a   : > { %670 = vmatprep.subr.msk.mxu0 %vm303_vm0, %v285_v12  ;;  %701 = vmatprep.subr.msk.mxu1 %vm303_vm0, %v285_v12 }
  0x2d   : > { %671 = vmatpush3.xpose.msk.msra.mxu0 %vm303_vm0, %v269_v13  ;;  %717 = vmatpush3.xpose.msk.msra.mxu1 %vm303_vm0, %v269_v13 }
  0x2e   : > { %672 = vmatprep.subr.msk.mxu0 %vm303_vm0, %v284_v14  ;;  %702 = vmatprep.subr.msk.mxu1 %vm303_vm0, %v284_v14 }
  0x31   : > { %673 = vmatpush3.xpose.msk.msra.mxu0 %vm303_vm0, %v268_v15  ;;  %718 = vmatpush3.xpose.msk.msra.mxu1 %vm303_vm0, %v268_v15 }
  0x32   : > { %674 = vmatprep.subr.msk.mxu0 %vm303_vm0, %v283_v16  ;;  %703 = vmatprep.subr.msk.mxu1 %vm303_vm0, %v283_v16 }
  0x35   : > { %675 = vmatpush3.xpose.msk.msra.mxu0 %vm303_vm0, %v267_v17  ;;  %719 = vmatpush3.xpose.msk.msra.mxu1 %vm303_vm0, %v267_v17 }
  0x36   : > { %676 = vmatprep.subr.msk.mxu0 %vm303_vm0, %v282_v18  ;;  %704 = vmatprep.subr.msk.mxu1 %vm303_vm0, %v282_v18 }
  0x39   : > { %677 = vmatpush3.xpose.msk.msra.mxu0 %vm303_vm0, %v266_v19  ;;  %720 = vmatpush3.xpose.msk.msra.mxu1 %vm303_vm0, %v266_v19 }
  0x3a   : > { %678 = vmatprep.subr.msk.mxu0 %vm303_vm0, %v281_v20  ;;  %705 = vmatprep.subr.msk.mxu1 %vm303_vm0, %v281_v20 }
  0x3d   : > { %679 = vmatpush3.xpose.msk.msra.mxu0 %vm303_vm0, %v265_v21  ;;  %721 = vmatpush3.xpose.msk.msra.mxu1 %vm303_vm0, %v265_v21 }
  0x3e   : > { %680 = vmatprep.subr.msk.mxu0 %vm303_vm0, %v280_v22  ;;  %706 = vmatprep.subr.msk.mxu1 %vm303_vm0, %v280_v22 }
  0x41   : > { %681 = vmatpush3.xpose.msk.msra.mxu0 %vm303_vm0, %v264_v23  ;;  %722 = vmatpush3.xpose.msk.msra.mxu1 %vm303_vm0, %v264_v23 }
  0x42   : > { %682 = vmatprep.subr.msk.mxu0 %vm303_vm0, %v279_v24  ;;  %707 = vmatprep.subr.msk.mxu1 %vm303_vm0, %v279_v24 }
  0x45   : > { %683 = vmatpush3.xpose.msk.msra.mxu0 %vm303_vm0, %v263_v25  ;;  %723 = vmatpush3.xpose.msk.msra.mxu1 %vm303_vm0, %v263_v25 }
  0x46   : > { %684 = vmatprep.subr.msk.mxu0 %vm303_vm0, %v278_v26  ;;  %708 = vmatprep.subr.msk.mxu1 %vm303_vm0, %v278_v26 }
  0x49   : > { %685 = vmatpush3.xpose.msk.msra.mxu0 %vm303_vm0, %v262_v27  ;;  %724 = vmatpush3.xpose.msk.msra.mxu1 %vm303_vm0, %v262_v27 }
  0x4a   : > { %686 = vmatprep.subr.msk.mxu0 %vm303_vm0, %v277_v28  ;;  %709 = vmatprep.subr.msk.mxu1 %vm303_vm0, %v277_v28 }
  0x4d   : > { %687 = vmatpush3.xpose.msk.msra.mxu0 %vm303_vm0, %v261_v29  ;;  %725 = vmatpush3.xpose.msk.msra.mxu1 %vm303_vm0, %v261_v29 }
  0x4e   : > { %688 = vmatprep.subr.msk.mxu0 %vm303_vm0, %v276_v30  ;;  %710 = vmatprep.subr.msk.mxu1 %vm303_vm0, %v276_v30 }
  0x51   : > { %689 = vmatpush3.xpose.msk.msra.mxu0 %vm303_vm0, %v260_v31  ;;  %726 = vmatpush3.xpose.msk.msra.mxu1 %vm303_vm0, %v260_v31 }
  0x52   : > { %690 = vmatprep.subr.msk.mxu0 %vm303_vm0, %v275_v32  ;;  %711 = vmatprep.subr.msk.mxu1 %vm303_vm0, %v275_v32 }
  0x55   : > { %691 = vmatpush3.xpose.msk.msra.mxu0 %vm303_vm0, %v259_v33  ;;  %727 = vmatpush3.xpose.msk.msra.mxu1 %vm303_vm0, %v259_v33 }
  0x58   : > { %693 = vmatmul.mubr.msk.f32.vlgmr.msra.gmra.mxu0 %vm303_vm0, %v947_v0  ;;  %695 = vmatmul.mubr.msk.f32.vlgmr.msra.gmra.mxu1 %vm303_vm0, %v952_v1 }
 0x118   : > { %v472_v41 = vpop.f32.mrf.mxu0  ;;  %v478_v42 = vpop.f32.mrf.mxu1 }
 0x119   : > { %v473_v43 = vadd.f32 %v472_v41, %v296_v39  ;;  %v479_v44 = vadd.f32 %v478_v42, %v296_v39 }
 0x11a   : > { %v474_v45 = vpop.f32.mrf.mxu0  ;;  %v480_v46 = vpop.f32.mrf.mxu1 }
 0x11b   : > { %483 = vst [vmem:[%s231_s21] sm:$0xff] %v473_v43  ;;  %485 = vst [vmem:[%s231_s21 + $0x10] sm:$0xff] %v479_v44  ;;  %v475_v47 = vadd.f32 %v474_v45, %v300_v40  ;;  %v481_v48 = vadd.f32 %v480_v46, %v300_v40 }
 0x11d   : > { %484 = vst [vmem:[%s231_s21 + $0x8] sm:$0xff] %v475_v47  ;;  %486 = vst [vmem:[%s231_s21 + $0x18] sm:$0xff] %v481_v48 }
 0x11e   : > { %799 = shalt.err (!%p796_p6)
}
 0x11f   : > { %s800_s7 = scalar_lea.hbm %s1074_s29, 512  ;;  %s804_s10 = scalar_lea.hbm %s1124_s3, 1024 }
 0x120   : > { %p801_p7 = scmp.ne.s32.totalorder %s1074_s29, %s800_s7  ;;  %p805_p11 = scmp.lt.s32.totalorder %s1074_s29, %s1124_s3 }
 0x121   : > { %p806_p12 = scmp.lt.s32.totalorder %s804_s10, %s800_s7 }
 0x122   : > { %p802_p9 = pnand %p801_p7, %p928_p4 }
 0x123   : > { %p807_p13 = por %p806_p12, %p805_p11 }
 0x124   : > { %p803_p10 = pneg %p802_p9 }
 0x126   : > { %p808_p0 = pnand %p807_p13, %p803_p10 }
 0x128   : > { %811 = shalt.err (!%p808_p0)
}
 0x129   : > { %s865_s19 = smov 256   ;;  %s866_s21 = smov 512  }
 0x12a   : > { %s867_s26 = smov 16  }
 0x12b   : > { %728 = dma.vmem_to_hbm [thread:$0]  (%p928_p4), %s1069_s23, 512, %s1074_s29, %s1076_s15, %s865_s19, %s866_s21, %s867_s26  }
 0x12c PF: > { %p734_p1 = scmp.ge.s32.totalorder %s862_s17, 2  ;;  %s519_s27 = sand.u32 1, %s842_s12  }
 0x12d   : > { %s520_s28 = scalar_lea.sflag [#allocation3], %s519_s27 }
 0x12e   : > { %p731_p2 = pnand %p734_p1, %p935_p8 }
 0x130   : > { %p732_p3 = pneg %p731_p2 }
 0x132   : > { %837 = dma.done.wait (%p732_p3), %s520_s28, 512  }
 0x133   : > { %839 = vsyncadd (%p732_p3), %s520_s28, 4294966784  ;;  %s16_s17 = sadd.s32 1, %s862_s17   ;;  %s1127_s12 = smov %s846_s13 }
 0x134   : > { %p13_p5 = scmp.ge.s32.totalorder %s16_s17, 4   ;;  %s1128_s13 = smov %s850_s14 }
 0x135   : > { %s1129_s14 = smov %s941_s25  ;;  %s1130_s15 = smov %s858_s16 }
 0x136   : > { %s1131_s16 = smov %s1133_s20  ;;  %15 = sbr.rel (!%p13_p5) target bundleno = 4 (0x4), region = 73 }
 0x13b   :  { %525 = vsyncpa [#allocation3], 1 }
 0x13c   :  { %527 = vsyncpa [#allocation3 + $0x1], 1 }

</bundles_post_ra>
